<compile_context>
chip_gen: v7x
topology: tpu7x:2x2x1
jax: 0.10.0
libtpu: 0.0.40
codegen_flags: <defaults>
</compile_context>

<pallas_src>
import functools

import jax
import jax.numpy as jnp
from jax.experimental import pallas as pl
from jax.experimental.pallas import tpu as pltpu


def _resblock_kernel(x_ref, w_ref, b_ref, o_ref, *, H, W):
    """One image per grid step, lane-dense (C, H*W) layout.

    x_ref: (1, C, H*W)  input image, channels on sublanes, flat spatial on lanes
    w_ref: (9, C, C)    per-tap weights, w_ref[kh*3 + kw][c_out, c_in]
    b_ref: (C, 1)       conv bias (broadcasts across the lane axis)
    o_ref: (1, C, H*W)  output image
    """
    HW = H * W
    C = x_ref.shape[1]

    x = x_ref[0]  # (C, HW) f32; reused for all taps and the residual add.

    # Flat spatial index per lane; h = pos // W, w = pos % W.
    pos = jax.lax.broadcasted_iota(jnp.int32, (C, HW), 1)
    w_idx = pos % W
    # Elementary boundary masks, computed once and AND-combined per tap.
    h_ge_1 = pos >= W              # h >= 1
    h_le_m2 = pos < (H - 1) * W    # h <= H - 2
    w_ge_1 = w_idx >= 1            # w >= 1
    w_le_m2 = w_idx < (W - 1)      # w <= W - 2

    acc = jnp.zeros((C, HW), jnp.float32)
    for dh in (-1, 0, 1):
        for dw in (-1, 0, 1):
            tap = (dh + 1) * 3 + (dw + 1)
            # Want src[p] = x[p + dh*W + dw]  ->  roll by the negated offset
            # (pltpu.roll follows jnp.roll semantics: out[i] = in[i - shift]).
            shift = (-(dh * W + dw)) % HW
            src = x if shift == 0 else pltpu.roll(x, shift=shift, axis=1)
            # Zero positions whose neighbour falls outside the image
            # ('same' zero padding, done in registers instead of VMEM scratch).
            mask = None
            if dh == -1:
                mask = h_ge_1
            elif dh == 1:
                mask = h_le_m2
            if dw == -1:
                mask = w_ge_1 if mask is None else (mask & w_ge_1)
            elif dw == 1:
                mask = w_le_m2 if mask is None else (mask & w_le_m2)
            if mask is not None:
                src = jnp.where(mask, src, 0.0)
            # Channel mixing on the (otherwise idle) MXU; f32 accumulation.
            acc = acc + jnp.dot(w_ref[tap], src,
                                preferred_element_type=jnp.float32)

    conv = jnp.maximum(acc + b_ref[...], 0.0)     # bias, then ReLU
    o_ref[0] = (x + conv).astype(o_ref.dtype)     # residual add (lane-dense store)


def resblock_pallas(x_nchw, weight_oihw, bias):
    """x_nchw: (N, C, H, W) f32; weight_oihw: (C_out, C_in, 3, 3); bias: (C,).
    Returns (N, C, H, W) = x + relu(conv3x3_same(x) + b)."""
    N, C, H, W = x_nchw.shape
    HW = H * W
    assert weight_oihw.shape == (C, C, 3, 3)

    # Wrapper-side layout plumbing (pure reshapes / tiny transposes):
    x_flat = x_nchw.reshape(N, C, HW)
    w_taps = jnp.transpose(weight_oihw, (2, 3, 0, 1)).reshape(9, C, C)
    b_col = bias.reshape(C, 1).astype(jnp.float32)

    kernel = functools.partial(_resblock_kernel, H=H, W=W)

    out_flat = pl.pallas_call(
        kernel,
        out_shape=jax.ShapeDtypeStruct((N, C, HW), x_nchw.dtype),
        grid_spec=pltpu.PrefetchScalarGridSpec(
            num_scalar_prefetch=0,
            grid=(N,),  # >= 2 parallel steps so v7x's 2 TensorCores both work
            in_specs=[
                pl.BlockSpec((1, C, HW), lambda n: (n, 0, 0)),
                pl.BlockSpec((9, C, C), lambda n: (0, 0, 0)),
                pl.BlockSpec((C, 1), lambda n: (0, 0)),
            ],
            out_specs=pl.BlockSpec((1, C, HW), lambda n: (n, 0, 0)),
        ),
        compiler_params=pltpu.CompilerParams(
            dimension_semantics=("parallel",),
            vmem_limit_bytes=32 * 1024 * 1024,  # explicit budget; safe on v5e/v6e/v7x
        ),
    )(x_flat, w_taps, b_col)
    return out_flat.reshape(N, C, H, W)


def resblock_reference(x_nchw, weight_oihw, bias):
    """Pure-JAX reference: x + relu(conv3x3_same(x) + b), NCHW/OIHW."""
    conv = jax.lax.conv_general_dilated(
        x_nchw, weight_oihw,
        window_strides=(1, 1),
        padding="SAME",
        dimension_numbers=("NCHW", "OIHW", "NCHW"),
    )
    return x_nchw + jnp.maximum(conv + bias.reshape(1, -1, 1, 1), 0.0)


if __name__ == "__main__":
    key = jax.random.PRNGKey(0)
    k_x, k_w, k_b = jax.random.split(key, 3)

    N, C, H, W = 2, 4, 16, 16  # PyTorch-style NCHW input shape: (2, 4, 16, 16)

    x = jax.random.normal(k_x, (N, C, H, W), dtype=jnp.float32)
    # Deterministic Conv2d(n_chan, n_chan, 3, 1, 1)-style parameters.
    fan_in = C * 3 * 3
    bound = 1.0 / jnp.sqrt(fan_in)
    w_oihw = jax.random.uniform(k_w, (C, C, 3, 3), jnp.float32, -bound, bound)
    bias = jax.random.uniform(k_b, (C,), jnp.float32, -bound, bound)

    out = jax.block_until_ready(resblock_pallas(x, w_oihw, bias))

    ref = resblock_reference(x, w_oihw, bias)
    assert jnp.allclose(out, ref, atol=1e-4, rtol=1e-4), (
        "Pallas resblock output mismatch vs JAX reference"
    )

    print("KERNEL_OK")
</pallas_src>

<mosaic_0001>
module attributes {stable_mosaic.version = 11 : i64} {
  func.func @_resblock_kernel(%arg0: i32, %arg1: memref<1x4x256xf32, #tpu.memory_space<vmem>>, %arg2: memref<9x4x4xf32, #tpu.memory_space<vmem>>, %arg3: memref<4x1xf32, #tpu.memory_space<vmem>>, %arg4: memref<1x4x256xf32, #tpu.memory_space<vmem>>) attributes {dimension_semantics = [#tpu.dimension_semantics<parallel>], iteration_bounds = array<i64: 2>, scalar_prefetch = 0 : i64, scratch_operands = 0 : i64, tpu.core_type = #tpu.core_type<tc>, window_params = [{transform_indices = @transform_0, window_bounds = array<i64: 1, 4, 256>}, {pipeline_mode = #tpu.pipeline_mode<synchronous>, transform_indices = @transform_1, window_bounds = array<i64: 9, 4, 4>}, {pipeline_mode = #tpu.pipeline_mode<synchronous>, transform_indices = @transform_2, window_bounds = array<i64: 4, 1>}, {transform_indices = @transform_3, window_bounds = array<i64: 1, 4, 256>}]} {
    %c0 = arith.constant 0 : index
    %c0_0 = arith.constant 0 : index
    %c0_1 = arith.constant 0 : index
    %0 = vector.load %arg1[%c0, %c0_0, %c0_1] : memref<1x4x256xf32, #tpu.memory_space<vmem>>, vector<1x4x256xf32>
    %1 = vector.shape_cast %0 : vector<1x4x256xf32> to vector<4x256xf32>
    %2 = tpu.iota {dimensions = array<i32: 1>} : vector<4x256xi32>
    %c16_i32 = arith.constant 16 : i32
    %c0_i32 = arith.constant 0 : i32
    %3 = arith.cmpi eq, %c16_i32, %c0_i32 : i32
    %c1_i32 = arith.constant 1 : i32
    %4 = arith.select %3, %c1_i32, %c16_i32 : i32
    %5 = vector.broadcast %4 : i32 to vector<4x256xi32>
    %6 = arith.remsi %2, %5 : vector<4x256xi32>
    %c0_i32_2 = arith.constant 0 : i32
    %7 = vector.broadcast %c0_i32_2 : i32 to vector<4x256xi32>
    %8 = arith.cmpi ne, %6, %7 : vector<4x256xi32>
    %c0_i32_3 = arith.constant 0 : i32
    %9 = vector.broadcast %c0_i32_3 : i32 to vector<4x256xi32>
    %10 = arith.cmpi slt, %6, %9 : vector<4x256xi32>
    %c0_i32_4 = arith.constant 0 : i32
    %11 = arith.cmpi slt, %4, %c0_i32_4 : i32
    %12 = vector.broadcast %11 : i1 to vector<4x256xi1>
    %13 = vector.broadcast %12 : vector<4x256xi1> to vector<4x256xi1>
    %14 = arith.xori %10, %13 : vector<4x256xi1>
    %15 = arith.andi %14, %8 : vector<4x256xi1>
    %16 = vector.broadcast %4 : i32 to vector<4x256xi32>
    %17 = arith.addi %6, %16 : vector<4x256xi32>
    %18 = arith.select %15, %17, %6 : vector<4x256xi1>, vector<4x256xi32>
    %c16_i32_5 = arith.constant 16 : i32
    %19 = vector.broadcast %c16_i32_5 : i32 to vector<4x256xi32>
    %20 = arith.cmpi sge, %2, %19 : vector<4x256xi32>
    %c240_i32 = arith.constant 240 : i32
    %21 = vector.broadcast %c240_i32 : i32 to vector<4x256xi32>
    %22 = arith.cmpi slt, %2, %21 : vector<4x256xi32>
    %c1_i32_6 = arith.constant 1 : i32
    %23 = vector.broadcast %c1_i32_6 : i32 to vector<4x256xi32>
    %24 = arith.cmpi sge, %18, %23 : vector<4x256xi32>
    %c15_i32 = arith.constant 15 : i32
    %25 = vector.broadcast %c15_i32 : i32 to vector<4x256xi32>
    %26 = arith.cmpi slt, %18, %25 : vector<4x256xi32>
    %cst = arith.constant 0.000000e+00 : f32
    %27 = vector.broadcast %cst : f32 to vector<4x256xf32>
    %c17_i32 = arith.constant 17 : i32
    %28 = tpu.dynamic_rotate %1 by %c17_i32 dim 1 : vector<4x256xf32>, i32 -> vector<4x256xf32>
    %29 = arith.andi %20, %24 : vector<4x256xi1>
    %cst_7 = arith.constant 0.000000e+00 : f32
    %30 = vector.broadcast %cst_7 : f32 to vector<4x256xf32>
    %31 = arith.select %29, %28, %30 : vector<4x256xi1>, vector<4x256xf32>
    %c0_8 = arith.constant 0 : index
    %c0_9 = arith.constant 0 : index
    %c0_10 = arith.constant 0 : index
    %32 = vector.load %arg2[%c0_8, %c0_9, %c0_10] : memref<9x4x4xf32, #tpu.memory_space<vmem>>, vector<1x4x4xf32>
    %33 = vector.shape_cast %32 : vector<1x4x4xf32> to vector<4x4xf32>
    %cst_11 = arith.constant dense<0.000000e+00> : vector<4x256xf32>
    %34 = tpu.matmul %33, %31, %cst_11 {dimension_numbers = #tpu.dot_dimension_numbers<[1], [0], [0], [1], [0, 0, 1, 1], [], []>} : vector<4x4xf32>, vector<4x256xf32>, vector<4x256xf32> -> vector<4x256xf32>
    %35 = arith.addf %27, %34 : vector<4x256xf32>
    %c16_i32_12 = arith.constant 16 : i32
    %36 = tpu.dynamic_rotate %1 by %c16_i32_12 dim 1 : vector<4x256xf32>, i32 -> vector<4x256xf32>
    %cst_13 = arith.constant 0.000000e+00 : f32
    %37 = vector.broadcast %cst_13 : f32 to vector<4x256xf32>
    %38 = arith.select %20, %36, %37 : vector<4x256xi1>, vector<4x256xf32>
    %c1 = arith.constant 1 : index
    %c0_14 = arith.constant 0 : index
    %c0_15 = arith.constant 0 : index
    %39 = vector.load %arg2[%c1, %c0_14, %c0_15] : memref<9x4x4xf32, #tpu.memory_space<vmem>>, vector<1x4x4xf32>
    %40 = vector.shape_cast %39 : vector<1x4x4xf32> to vector<4x4xf32>
    %cst_16 = arith.constant dense<0.000000e+00> : vector<4x256xf32>
    %41 = tpu.matmul %40, %38, %cst_16 {dimension_numbers = #tpu.dot_dimension_numbers<[1], [0], [0], [1], [0, 0, 1, 1], [], []>} : vector<4x4xf32>, vector<4x256xf32>, vector<4x256xf32> -> vector<4x256xf32>
    %42 = arith.addf %35, %41 : vector<4x256xf32>
    %c15_i32_17 = arith.constant 15 : i32
    %43 = tpu.dynamic_rotate %1 by %c15_i32_17 dim 1 : vector<4x256xf32>, i32 -> vector<4x256xf32>
    %44 = arith.andi %20, %26 : vector<4x256xi1>
    %cst_18 = arith.constant 0.000000e+00 : f32
    %45 = vector.broadcast %cst_18 : f32 to vector<4x256xf32>
    %46 = arith.select %44, %43, %45 : vector<4x256xi1>, vector<4x256xf32>
    %c2 = arith.constant 2 : index
    %c0_19 = arith.constant 0 : index
    %c0_20 = arith.constant 0 : index
    %47 = vector.load %arg2[%c2, %c0_19, %c0_20] : memref<9x4x4xf32, #tpu.memory_space<vmem>>, vector<1x4x4xf32>
    %48 = vector.shape_cast %47 : vector<1x4x4xf32> to vector<4x4xf32>
    %cst_21 = arith.constant dense<0.000000e+00> : vector<4x256xf32>
    %49 = tpu.matmul %48, %46, %cst_21 {dimension_numbers = #tpu.dot_dimension_numbers<[1], [0], [0], [1], [0, 0, 1, 1], [], []>} : vector<4x4xf32>, vector<4x256xf32>, vector<4x256xf32> -> vector<4x256xf32>
    %50 = arith.addf %42, %49 : vector<4x256xf32>
    %c1_i32_22 = arith.constant 1 : i32
    %51 = tpu.dynamic_rotate %1 by %c1_i32_22 dim 1 : vector<4x256xf32>, i32 -> vector<4x256xf32>
    %cst_23 = arith.constant 0.000000e+00 : f32
    %52 = vector.broadcast %cst_23 : f32 to vector<4x256xf32>
    %53 = arith.select %24, %51, %52 : vector<4x256xi1>, vector<4x256xf32>
    %c3 = arith.constant 3 : index
    %c0_24 = arith.constant 0 : index
    %c0_25 = arith.constant 0 : index
    %54 = vector.load %arg2[%c3, %c0_24, %c0_25] : memref<9x4x4xf32, #tpu.memory_space<vmem>>, vector<1x4x4xf32>
    %55 = vector.shape_cast %54 : vector<1x4x4xf32> to vector<4x4xf32>
    %cst_26 = arith.constant dense<0.000000e+00> : vector<4x256xf32>
    %56 = tpu.matmul %55, %53, %cst_26 {dimension_numbers = #tpu.dot_dimension_numbers<[1], [0], [0], [1], [0, 0, 1, 1], [], []>} : vector<4x4xf32>, vector<4x256xf32>, vector<4x256xf32> -> vector<4x256xf32>
    %57 = arith.addf %50, %56 : vector<4x256xf32>
    %c4 = arith.constant 4 : index
    %c0_27 = arith.constant 0 : index
    %c0_28 = arith.constant 0 : index
    %58 = vector.load %arg2[%c4, %c0_27, %c0_28] : memref<9x4x4xf32, #tpu.memory_space<vmem>>, vector<1x4x4xf32>
    %59 = vector.shape_cast %58 : vector<1x4x4xf32> to vector<4x4xf32>
    %cst_29 = arith.constant dense<0.000000e+00> : vector<4x256xf32>
    %60 = tpu.matmul %59, %1, %cst_29 {dimension_numbers = #tpu.dot_dimension_numbers<[1], [0], [0], [1], [0, 0, 1, 1], [], []>} : vector<4x4xf32>, vector<4x256xf32>, vector<4x256xf32> -> vector<4x256xf32>
    %61 = arith.addf %57, %60 : vector<4x256xf32>
    %c255_i32 = arith.constant 255 : i32
    %62 = tpu.dynamic_rotate %1 by %c255_i32 dim 1 : vector<4x256xf32>, i32 -> vector<4x256xf32>
    %cst_30 = arith.constant 0.000000e+00 : f32
    %63 = vector.broadcast %cst_30 : f32 to vector<4x256xf32>
    %64 = arith.select %26, %62, %63 : vector<4x256xi1>, vector<4x256xf32>
    %c5 = arith.constant 5 : index
    %c0_31 = arith.constant 0 : index
    %c0_32 = arith.constant 0 : index
    %65 = vector.load %arg2[%c5, %c0_31, %c0_32] : memref<9x4x4xf32, #tpu.memory_space<vmem>>, vector<1x4x4xf32>
    %66 = vector.shape_cast %65 : vector<1x4x4xf32> to vector<4x4xf32>
    %cst_33 = arith.constant dense<0.000000e+00> : vector<4x256xf32>
    %67 = tpu.matmul %66, %64, %cst_33 {dimension_numbers = #tpu.dot_dimension_numbers<[1], [0], [0], [1], [0, 0, 1, 1], [], []>} : vector<4x4xf32>, vector<4x256xf32>, vector<4x256xf32> -> vector<4x256xf32>
    %68 = arith.addf %61, %67 : vector<4x256xf32>
    %c241_i32 = arith.constant 241 : i32
    %69 = tpu.dynamic_rotate %1 by %c241_i32 dim 1 : vector<4x256xf32>, i32 -> vector<4x256xf32>
    %70 = arith.andi %22, %24 : vector<4x256xi1>
    %cst_34 = arith.constant 0.000000e+00 : f32
    %71 = vector.broadcast %cst_34 : f32 to vector<4x256xf32>
    %72 = arith.select %70, %69, %71 : vector<4x256xi1>, vector<4x256xf32>
    %c6 = arith.constant 6 : index
    %c0_35 = arith.constant 0 : index
    %c0_36 = arith.constant 0 : index
    %73 = vector.load %arg2[%c6, %c0_35, %c0_36] : memref<9x4x4xf32, #tpu.memory_space<vmem>>, vector<1x4x4xf32>
    %74 = vector.shape_cast %73 : vector<1x4x4xf32> to vector<4x4xf32>
    %cst_37 = arith.constant dense<0.000000e+00> : vector<4x256xf32>
    %75 = tpu.matmul %74, %72, %cst_37 {dimension_numbers = #tpu.dot_dimension_numbers<[1], [0], [0], [1], [0, 0, 1, 1], [], []>} : vector<4x4xf32>, vector<4x256xf32>, vector<4x256xf32> -> vector<4x256xf32>
    %76 = arith.addf %68, %75 : vector<4x256xf32>
    %c240_i32_38 = arith.constant 240 : i32
    %77 = tpu.dynamic_rotate %1 by %c240_i32_38 dim 1 : vector<4x256xf32>, i32 -> vector<4x256xf32>
    %cst_39 = arith.constant 0.000000e+00 : f32
    %78 = vector.broadcast %cst_39 : f32 to vector<4x256xf32>
    %79 = arith.select %22, %77, %78 : vector<4x256xi1>, vector<4x256xf32>
    %c7 = arith.constant 7 : index
    %c0_40 = arith.constant 0 : index
    %c0_41 = arith.constant 0 : index
    %80 = vector.load %arg2[%c7, %c0_40, %c0_41] : memref<9x4x4xf32, #tpu.memory_space<vmem>>, vector<1x4x4xf32>
    %81 = vector.shape_cast %80 : vector<1x4x4xf32> to vector<4x4xf32>
    %cst_42 = arith.constant dense<0.000000e+00> : vector<4x256xf32>
    %82 = tpu.matmul %81, %79, %cst_42 {dimension_numbers = #tpu.dot_dimension_numbers<[1], [0], [0], [1], [0, 0, 1, 1], [], []>} : vector<4x4xf32>, vector<4x256xf32>, vector<4x256xf32> -> vector<4x256xf32>
    %83 = arith.addf %76, %82 : vector<4x256xf32>
    %c239_i32 = arith.constant 239 : i32
    %84 = tpu.dynamic_rotate %1 by %c239_i32 dim 1 : vector<4x256xf32>, i32 -> vector<4x256xf32>
    %85 = arith.andi %22, %26 : vector<4x256xi1>
    %cst_43 = arith.constant 0.000000e+00 : f32
    %86 = vector.broadcast %cst_43 : f32 to vector<4x256xf32>
    %87 = arith.select %85, %84, %86 : vector<4x256xi1>, vector<4x256xf32>
    %c8 = arith.constant 8 : index
    %c0_44 = arith.constant 0 : index
    %c0_45 = arith.constant 0 : index
    %88 = vector.load %arg2[%c8, %c0_44, %c0_45] : memref<9x4x4xf32, #tpu.memory_space<vmem>>, vector<1x4x4xf32>
    %89 = vector.shape_cast %88 : vector<1x4x4xf32> to vector<4x4xf32>
    %cst_46 = arith.constant dense<0.000000e+00> : vector<4x256xf32>
    %90 = tpu.matmul %89, %87, %cst_46 {dimension_numbers = #tpu.dot_dimension_numbers<[1], [0], [0], [1], [0, 0, 1, 1], [], []>} : vector<4x4xf32>, vector<4x256xf32>, vector<4x256xf32> -> vector<4x256xf32>
    %91 = arith.addf %83, %90 : vector<4x256xf32>
    %c0_47 = arith.constant 0 : index
    %c0_48 = arith.constant 0 : index
    %92 = vector.load %arg3[%c0_47, %c0_48] : memref<4x1xf32, #tpu.memory_space<vmem>>, vector<4x1xf32>
    %93 = vector.broadcast %92 : vector<4x1xf32> to vector<4x256xf32>
    %94 = arith.addf %91, %93 : vector<4x256xf32>
    %cst_49 = arith.constant 0.000000e+00 : f32
    %95 = vector.broadcast %cst_49 : f32 to vector<4x256xf32>
    %96 = arith.maximumf %94, %95 : vector<4x256xf32>
    %97 = arith.addf %1, %96 : vector<4x256xf32>
    %c0_50 = arith.constant 0 : index
    %c0_51 = arith.constant 0 : index
    %c0_52 = arith.constant 0 : index
    %98 = vector.load %arg4[%c0_50, %c0_51, %c0_52] : memref<1x4x256xf32, #tpu.memory_space<vmem>>, vector<1x4x256xf32>
    %99 = vector.shape_cast %98 : vector<1x4x256xf32> to vector<4x256xf32>
    %100 = vector.shape_cast %97 : vector<4x256xf32> to vector<1x4x256xf32>
    tpu.vector_store %arg4[%c0_50, %c0_51, %c0_52], %100 {strides = array<i32>} : memref<1x4x256xf32, #tpu.memory_space<vmem>>, vector<1x4x256xf32>,
    return
  }
  func.func @transform_0(%arg0: i32) -> (i32, i32, i32) {
    %c0_i32 = arith.constant 0 : i32
    %c0_i32_0 = arith.constant 0 : i32
    %c0_i32_1 = arith.constant 0 : i32
    return %arg0, %c0_i32, %c0_i32_0 : i32, i32, i32
  }
  func.func @transform_1(%arg0: i32) -> (i32, i32, i32) {
    %c0_i32 = arith.constant 0 : i32
    %c0_i32_0 = arith.constant 0 : i32
    %c0_i32_1 = arith.constant 0 : i32
    %c0_i32_2 = arith.constant 0 : i32
    return %c0_i32, %c0_i32_0, %c0_i32_1 : i32, i32, i32
  }
  func.func @transform_2(%arg0: i32) -> (i32, i32) {
    %c0_i32 = arith.constant 0 : i32
    %c0_i32_0 = arith.constant 0 : i32
    %c0_i32_1 = arith.constant 0 : i32
    return %c0_i32, %c0_i32_0 : i32, i32
  }
  func.func @transform_3(%arg0: i32) -> (i32, i32, i32) {
    %c0_i32 = arith.constant 0 : i32
    %c0_i32_0 = arith.constant 0 : i32
    %c0_i32_1 = arith.constant 0 : i32
    return %arg0, %c0_i32, %c0_i32_0 : i32, i32, i32
  }
}

</mosaic_0001>

<bundles_post_ra>
// kernel: tpu_custom_call.1
= control target key start
LH: loop header
LB: loop body
LE: loop exit
PB: predicated region body
PF: predicated region fallthrough
CT: control target
= control target key end

     0   :  { %8 = vsyncpa [#allocation3], 0  ;;  %s1601_s0 = inlined_call_operand.vmem [shape: f32[2,4,256], index: 0, kind: input, shape index: {}]   ;;  %s1602_s1 = inlined_call_operand.vmem [shape: f32[9,4,4], index: 1, kind: input, shape index: {}]   ;;  %s1603_s2 = inlined_call_operand.vmem [shape: f32[4,1], index: 2, kind: input, shape index: {}]   ;;  %s1604_s3 = inlined_call_operand.hbm [shape: f32[2,4,256], index: 3, kind: output, shape index: {}]  }
   0x1   :  { %10 = vsyncpa [#allocation3 + $0x1], 0  ;;  %s1340_s12 = smov 0   ;;  %s1342_s13 = smov 0  }
   0x2   :  { %s1344_s14 = smov 0   ;;  %s1346_s15 = smov 0  }
   0x3 LB: > { %s1361_s16 = sadd.s32 4294967295, %s1307_s15   ;;  %s1129_s17 = sadd.s32 4294967294, %s1307_s15   ;;  %s1307_s15 = sphi %s1346_s15, %s1622_s15   ;;  %s1303_s14 = sphi %s1344_s14, %s1621_s14   ;;  %s1299_s13 = sphi %s1342_s13, %s1620_s13   ;;  %s1295_s12 = sphi %s1340_s12, %s1619_s12  }
   0x4   : > { %s1365_s18 = sadd.s32 1, %s1307_s15   ;;  %s91_s19 = sadd.s32 1, %s1303_s14 }
   0x5   : > { %s88_s20 = ssub.s32 %s1307_s15, %s1365_s18  ;;  %p101_p0 = scmp.ne.s32.totalorder %s1303_s14, %s1299_s13 }
   0x6   : > { %p89_p1 = scmp.eq.s32.totalorder %s88_s20, 0  ;;  %p102_p2 = scmp.eq.s32.totalorder %s1361_s16, 1 }
   0x7   : > { %p107_p3 = scmp.ne.s32.totalorder %s1299_s13, %s1295_s12  ;;  %p108_p4 = scmp.eq.s32.totalorder %s1129_s17, 1 }
   0x8   : > { %s1376_s21 = scalar_select %p89_p1, %s1303_s14, %s91_s19  }
   0x9   : > { %p1378_p5 = por %p102_p2, %p101_p0  ;;  %p1382_p6 = por %p108_p4, %p107_p3 }
   0xa   : > { %p1132_p7 = scmp.ge.s32.totalorder %s1307_s15, 1  ;;  %p140_p8 = scmp.lt.s32.totalorder %s1307_s15, 3 }
   0xc   : > { %p141_p9 = pnand %p1132_p7, %p140_p8 }
   0xd   : > { %p164_p10 = scmp.lt.s32.totalorder (!%p141_p9), %s1361_s16, 1  ;;  %v1309_v0 = vmov (!%p141_p9), 0.0   ;;  %vm235_vm0 = vcmask (!%p141_p9), 1043456   ;;  %s1310_s29 = smov (!%p141_p9), 16   ;;  %vm231_vm1 = vcmask (!%p141_p9), 31744   ;;  %v1316_v4 = vmov (!%p141_p9), 0  }
   0xe   : > { %144 = sbr.rel (%p141_p9) target bundleno = 410 (0x19a), region = 32  ;;  %654 = vmatprep.mubr.f32.mxu0 (!%p141_p9), %v1309_v0  ;;  %306 = vmatprep.mubr.f32.mxu1 (!%p141_p9), %v1309_v0  ;;  %s1311_s30 = smov (!%p141_p9), 127   ;;  %v1151_v3 = vld [vmem:[%s1602_s1 + $0x10] sm:$0xf] (!%p141_p9)  ;;  %v1039_v5 = vld [vmem:[%s1603_s2] sm:$0xf] (!%p141_p9)  ;;  %v170_v6 = vlaneseq (!%p141_p9) }
   0xf   : > { %s1312_s6 = smov (!%p141_p9), 17   ;;  %s1313_s7 = smov (!%p141_p9), 113   ;;  %1243 = vset.pattern.permute.xlu0 (!%p141_p9), %v1316_v4  ;;  %v1136_v22 = vld [vmem:[%s1602_s1 + $0x4] sm:$0xf] (!%p141_p9)  ;;  %v1155_v26 = vld [vmem:[%s1602_s1 + $0x14] sm:$0xf] (!%p141_p9) }
  0x10   : > { %s1314_s8 = smov (!%p141_p9), 15   ;;  %s1315_s9 = smov (!%p141_p9), 112   ;;  %v1418_v7 = vand.u32 (!%p141_p9), 127, %v170_v6  ;;  %v219_v39 = vld [vmem:[%s1602_s1] sm:$0xf] (!%p141_p9) }
  0x11   : > { %s1317_s10 = smov (!%p141_p9), 1   ;;  %s1318_s11 = smov (!%p141_p9), 111   ;;  %v1159_v42 = vld [vmem:[%s1602_s1 + $0x18] sm:$0xf] (!%p141_p9)  ;;  %v1143_v53 = vld [vmem:[%s1602_s1 + $0x8] sm:$0xf] (!%p141_p9) }
  0x12   : > { %v1421_v8 = vadd.s32 (!%p141_p9), 128, %v1418_v7  ;;  %v177_v9 = vand.u32 (!%p141_p9), 15, %v1418_v7  ;;  %vm224_vm2 = vcmp.lt.s32.totalorder (!%p141_p9), %v1418_v7, 16  ;;  %vm667_vm3 = vcmp.lt.s32.totalorder (!%p141_p9), %v1418_v7, 127  ;;  %v1163_v55 = vld [vmem:[%s1602_s1 + $0x1c] sm:$0xf] (!%p141_p9) }
  0x13   : > { %vm197_vm6 = vcmp.ge.s32.totalorder (!%p141_p9), %v1418_v7, 16  ;;  %vm212_vm8 = vcmp.lt.s32.totalorder (!%p141_p9), %v1418_v7, 17  ;;  %vm760_vm12 = vcmp.lt.s32.totalorder (!%p141_p9), %v1418_v7, 113  ;;  %vm397_vm14 = vcmp.lt.s32.totalorder (!%p141_p9), %v1418_v7, 15  ;;  %s161_s17 = sand.u32 (!%p141_p9), 1, %s1299_s13   ;;  %s1177_s20 = sshll.u32 (!%p141_p9), %s1361_s16, 7 }
  0x14   : > { %v184_v10 = vand.u32 (!%p141_p9), 15, %v1421_v8  ;;  %vm1427_vm4 = vcmp.lt.s32.totalorder (!%p141_p9), %v177_v9, 15  ;;  %vm1436_vm7 = vcmp.ge.s32.totalorder (!%p141_p9), %v177_v9, 1  ;;  %vm200_vm11 = vcmp.lt.s32.totalorder (!%p141_p9), %v1421_v8, 240  ;;  %s1133_s19 = sshll.u32 (!%p141_p9), %s161_s17, 3 }
  0x15   : > { %s165_s24 = scalar_select %p164_p10, %s1361_s16, 1  ;;  %vm1464_vm10 = vmand %vm197_vm6, %vm1436_vm7 }
  0x16   : > { %vm1431_vm5 = vcmp.lt.s32.totalorder %v184_v10, 15  ;;  %vm1456_vm9 = vcmp.ge.s32.totalorder %v184_v10, 1  ;;  %vm1499_vm15 = vmand %vm197_vm6, %vm1427_vm4  ;;  %s1319_s16 = smov [#allocation2]  }
  0x17   : > { %s1176_s25 = sshll.u32 %s165_s24, 3  ;;  %vm764_vm13 = vmand %vm200_vm11, %vm1456_vm9  ;;  %s163_s24 = scalar_lea.vmem [#allocation2], %s1133_s19 }
  0x18   : > { %s168_s28 = scalar_lea.vmem %s1601_s0, %s1176_s25  ;;  %s1070_s25 = sshll.u32 %s163_s24, 4  ;;  %s1561_s25 = int_to_ptr.vmem [resolvable:$true] %s1070_s25 }
  0x19   : > { %v1395_v1 = vld [vmem:[%s168_s28] sm:$0xff]  ;;  %s1559_s28 = scalar_lea.hbm %s1604_s3, %s1177_s20  ;;  %s1249_s4 = sshll.u32 %s1319_s16, 4  ;;  %s1250_s4 = int_to_ptr.vmem [resolvable:$false] %s1249_s4 }
  0x1a   : > { %220 = vrot.lane.b32.xlu1 %v1395_v1, %s1310_s29  ;;  %663 = vrot.lane.b32.xlu0 %v1395_v1, %s1311_s30  ;;  %v206_v2 = vcombine.high %v1395_v1, %v1395_v1  ;;  %s1251_s5 = scalar_lea.vmem %s1250_s4, 256  ;;  %p1252_p0 = scmp.lt.s32.totalorder %s1561_s25, %s1250_s4 }
  0x1c   : > { %1152 = vmatprep.subr.msk.mxu0 %vm235_vm0, %v206_v2 }
  0x1d   : > { %1153 = vmatpush1.msk.msra.mxu0 %vm235_vm0, %v1395_v1 }
  0x1e   : > { %222 = vrot.lane.b32.xlu1 %v206_v2, %s1310_s29  ;;  %665 = vrot.lane.b32.xlu0 %v206_v2, %s1311_s30  ;;  %s1056_s29 = scalar_lea.sflag [#allocation3], %s161_s17  ;;  %s1245_s30 = scalar_lea.vmem %s1561_s25, 128 }
  0x1f   : > { %1154 = vmatmul.mubr.msk.f32.vlgmr.msra.gmra.mrb[0].mxu0 %vm231_vm1, %v1151_v3  ;;  %p1246_p11 = scmp.ne.s32.totalorder %s1561_s25, %s1245_s30  ;;  %p1253_p1 = scmp.lt.s32.totalorder %s1251_s5, %s1245_s30 }
  0x20   : > { %747 = vmatprep.mubr.f32.mxu0 %v1309_v0 }
  0x21   : > { %p1247_p12 = pnand %p1246_p11, %p1378_p5  ;;  %p1254_p2 = por %p1253_p1, %p1252_p0 }
  0x22   : > { %210 = vrot.lane.b32.xlu1 %v206_v2, %s1312_s6  ;;  %208 = vrot.lane.b32.xlu0 %v1395_v1, %s1312_s6 }
  0x23   : > { %p1248_p13 = pneg %p1247_p12 }
  0x25   : > { %p1255_p3 = pnand %p1254_p2, %p1248_p13 }
  0x26   : > { %758 = vrot.lane.b32.xlu1 %v206_v2, %s1313_s7  ;;  %756 = vrot.lane.b32.xlu0 %v1395_v1, %s1313_s7 }
  0x2a   : > { %395 = vrot.lane.b32.xlu1 %v206_v2, %s1314_s8  ;;  %393 = vrot.lane.b32.xlu0 %v1395_v1, %s1314_s8 }
  0x2e   : > { %853 = vrot.lane.b32.xlu1 %v206_v2, %s1315_s9  ;;  %851 = vrot.lane.b32.xlu0 %v1395_v1, %s1315_s9 }
  0x32   : > { %490 = vrot.lane.b32.xlu1 %v206_v2, %s1317_s10  ;;  %488 = vrot.lane.b32.xlu0 %v1395_v1, %s1317_s10 }
  0x36   : > { %946 = vrot.lane.b32.xlu1 %v206_v2, %s1318_s11  ;;  %944 = vrot.lane.b32.xlu0 %v1395_v1, %s1318_s11 }
  0x3a   : > { %1042 = vperm.xlu0 %1243, %v1039_v5   ;;  %v1147_v5 = vld [vmem:[%s1602_s1 + $0xc] sm:$0xf] }
  0x8c   : > { %v221_v11 = vpop.permute.xlu1 %220  ;;  %v664_v12 = vpop.permute.xlu0 %663 }
  0x90   : > { %v223_v15 = vpop.permute.xlu1 %222  ;;  %v666_v16 = vpop.permute.xlu0 %665 }
  0x91   : > { %v226_v18 = vsel %vm224_vm2, %v223_v15, %v221_v11  ;;  %v668_v19 = vsel %vm667_vm3, %v664_v12, %v666_v16  ;;  %v669_v20 = vsel %vm667_vm3, %v666_v16, %v664_v12  ;;  %v225_v21 = vsel %vm224_vm2, %v221_v11, %v223_v15 }
  0x92   : > { %v670_v23 = vsel %vm1427_vm4, %v668_v19, 0.0  ;;  %v671_v24 = vsel %vm1431_vm5, %v669_v20, 0.0  ;;  %1137 = vmatprep.subr.msk.mxu1 %vm235_vm0, %v225_v21  ;;  %v227_v25 = vsel %vm197_vm6, %v226_v18, 0.0  ;;  %vm855_vm2 = vcmp.lt.s32.totalorder %v1418_v7, 112 }
  0x93   : > { %1138 = vmatpush1.msk.msra.mxu1 %vm235_vm0, %v227_v25  ;;  %1156 = vmatprep.subr.msk.mxu0 %vm235_vm0, %v671_v24  ;;  %vm492_vm3 = vcmp.lt.s32.totalorder %v1418_v7, 1  ;;  %vm948_vm6 = vcmp.lt.s32.totalorder %v1418_v7, 111  ;;  %v1167_v7 = vld [vmem:[%s1602_s1 + $0x20] sm:$0xf] }
  0x94   : > { %1139 = vmatmul.mubr.msk.f32.vlgmr.msra.gmra.mrb[0].mxu1 %vm231_vm1, %v1136_v22  ;;  %v211_v29 = vpop.permute.xlu1 %210  ;;  %v209_v30 = vpop.permute.xlu0 %208  ;;  %1157 = vmatpush1.msk.msra.mxu0 %vm235_vm0, %v670_v23 }
  0x95   : > { %v213_v31 = vsel %vm212_vm8, %v209_v30, %v211_v29  ;;  %v214_v32 = vsel %vm212_vm8, %v211_v29, %v209_v30  ;;  %1158 = vmatmul.mubr.msk.f32.vlgmr.msra.gmra.mrb[0].mxu0 %vm231_vm1, %v1155_v26  ;;  %386 = vmatprep.mubr.f32.mxu1 %v1309_v0  ;;  %vm952_vm8 = vmand %vm200_vm11, %vm1431_vm5 }
  0x96   : > { %v217_v33 = vsel %vm1464_vm10, %v214_v32, 0.0  ;;  %v218_v34 = vsel %vm1456_vm9, %v213_v31, 0.0  ;;  %842 = vmatprep.mubr.f32.mxu0 %v1309_v0 }
  0x97   : > { %1140 = vmatprep.subr.msk.mxu1 %vm235_vm0, %v218_v34 }
  0x98   : > { %v759_v35 = vpop.permute.xlu1 %758  ;;  %1141 = vmatpush1.msk.msra.mxu1 %vm235_vm0, %v217_v33  ;;  %v757_v36 = vpop.permute.xlu0 %756 }
  0x99   : > { %v761_v37 = vsel %vm760_vm12, %v757_v36, %v759_v35  ;;  %v762_v38 = vsel %vm760_vm12, %v759_v35, %v757_v36 }
  0x9a   : > { %v765_v40 = vsel %vm1436_vm7, %v761_v37, 0.0  ;;  %v766_v41 = vsel %vm764_vm13, %v762_v38, 0.0 }
  0x9b   : > { %1160 = vmatprep.subr.msk.mxu0 %vm235_vm0, %v766_v41 }
  0x9c   : > { %v396_v44 = vpop.permute.xlu1 %395  ;;  %1142 = vmatmul.mubr.msk.f32.vlgmr.msra.gmra.mrb[0].mxu1 %vm231_vm1, %v219_v39  ;;  %v394_v45 = vpop.permute.xlu0 %393  ;;  %1161 = vmatpush1.msk.msra.mxu0 %vm235_vm0, %v765_v40 }
  0x9d   : > { %v398_v46 = vsel %vm397_vm14, %v394_v45, %v396_v44  ;;  %v399_v47 = vsel %vm397_vm14, %v396_v44, %v394_v45  ;;  %1162 = vmatmul.mubr.msk.f32.vlgmr.msra.gmra.mrb[0].mxu0 %vm231_vm1, %v1159_v42  ;;  %479 = vmatprep.mubr.f32.mxu1 %v1309_v0 }
  0x9e   : > { %v402_v48 = vsel %vm1499_vm15, %v399_v47, 0.0  ;;  %v403_v49 = vsel %vm1431_vm5, %v398_v46, 0.0  ;;  %935 = vmatprep.mubr.f32.mxu0 %v1309_v0 }
  0x9f   : > { %1144 = vmatprep.subr.msk.mxu1 %vm235_vm0, %v403_v49 }
  0xa0   : > { %v854_v50 = vpop.permute.xlu1 %853  ;;  %1145 = vmatpush1.msk.msra.mxu1 %vm235_vm0, %v402_v48  ;;  %v852_v51 = vpop.permute.xlu0 %851 }
  0xa1   : > { %v857_v52 = vsel %vm855_vm2, %v854_v50, %v852_v51  ;;  %v856_v56 = vsel %vm855_vm2, %v852_v51, %v854_v50 }
  0xa2   : > { %v859_v54 = vsel %vm200_vm11, %v857_v52, 0.0 }
  0xa3   : > { %1164 = vmatprep.subr.msk.mxu0 %vm235_vm0, %v859_v54 }
  0xa4   : > { %v491_v57 = vpop.permute.xlu1 %490  ;;  %1146 = vmatmul.mubr.msk.f32.vlgmr.msra.gmra.mrb[0].mxu1 %vm231_vm1, %v1143_v53  ;;  %v489_v58 = vpop.permute.xlu0 %488  ;;  %1165 = vmatpush1.msk.msra.mxu0 %vm235_vm0, %v856_v56 }
  0xa5   : > { %v493_v59 = vsel %vm492_vm3, %v489_v58, %v491_v57  ;;  %v494_v60 = vsel %vm492_vm3, %v491_v57, %v489_v58  ;;  %1166 = vmatmul.mubr.msk.f32.vlgmr.msra.gmra.mrb[0].mxu0 %vm231_vm1, %v1163_v55  ;;  %572 = vmatprep.mubr.f32.mxu1 %v1309_v0 }
  0xa6   : > { %v495_v61 = vsel %vm1436_vm7, %v494_v60, 0.0  ;;  %v496_v62 = vsel %vm1456_vm9, %v493_v59, 0.0  ;;  %1030 = vmatprep.mubr.f32.mxu0 %v1309_v0 }
  0xa7   : > { %1148 = vmatprep.subr.msk.mxu1 %vm235_vm0, %v496_v62 }
  0xa8   : > { %v947_v63 = vpop.permute.xlu1 %946  ;;  %1149 = vmatpush1.msk.msra.mxu1 %vm235_vm0, %v495_v61  ;;  %v945_v2 = vpop.permute.xlu0 %944 }
  0xa9   : > { %v949_v3 = vsel %vm948_vm6, %v945_v2, %v947_v63  ;;  %v950_v4 = vsel %vm948_vm6, %v947_v63, %v945_v2 }
  0xaa   : > { %v953_v0 = vsel %vm1427_vm4, %v949_v3, 0.0  ;;  %v954_v6 = vsel %vm952_vm8, %v950_v4, 0.0 }
  0xab   : > { %1168 = vmatprep.subr.msk.mxu0 %vm235_vm0, %v954_v6 }
  0xac   : > { %1150 = vmatmul.mubr.msk.f32.vlgmr.msra.gmra.mrb[0].mxu1 %vm231_vm1, %v1147_v5  ;;  %1169 = vmatpush1.msk.msra.mxu0 %vm235_vm0, %v953_v0 }
  0xad   : > { %1170 = vmatmul.mubr.msk.f32.vlgmr.msra.gmra.mrb[0].mxu0 %vm231_vm1, %v1167_v7 }
  0xb9   : > { %v1043_v9 = vpop.permute.xlu0 %1042 }
 0x17f   : > { %v574_v8 = vpop.f32.mrb[0].mxu1 }
 0x180   : > { %v576_v10 = vpop.f32.mrb[1].mxu1  ;;  %v1032_v11 = vpop.f32.mrb[0].mxu0 }
 0x181   : > { %v1178_v12 = vadd.f32 %v1032_v11, %v574_v8  ;;  %v1034_v13 = vpop.f32.mrb[1].mxu0 }
 0x182   : > { %v1179_v14 = vadd.f32 %v1034_v13, %v576_v10 }
 0x183   : > { %v1045_v15 = vadd.f32 %v1178_v12, %v1043_v9 }
 0x184   : > { %v1046_v16 = vadd.f32 %v1179_v14, %v1043_v9 }
 0x185   : > { %v1047_v17 = vmax.f32 %v1045_v15, 0.0 }
 0x186   : > { %v1048_v18 = vmax.f32 %v1046_v16, 0.0 }
 0x188   : > { %v1051_v19 = vcombine.low %v1047_v17, %v1048_v18 }
 0x18a   : > { %v1053_v20 = vadd.f32 %v1051_v19, %v1395_v1 }
 0x18c   : > { %1054 = vst [vmem:[%s163_s24] sm:$0xff] %v1053_v20 }
 0x18d   : > { %1258 = shalt.err (!%p1255_p3)
}
 0x18e   : > { %s1259_s6 = scalar_lea.hbm %s1559_s28, 128  ;;  %s1263_s9 = scalar_lea.hbm %s1604_s3, 256 }
 0x18f   : > { %p1260_p4 = scmp.ne.s32.totalorder %s1559_s28, %s1259_s6  ;;  %p1264_p9 = scmp.lt.u32.totalorder %s1559_s28, %s1604_s3 }
 0x190   : > { %p1265_p10 = scmp.lt.u32.totalorder %s1263_s9, %s1259_s6  ;;  %p1267_p12 = scmp.lt.u32.totalorder %s1259_s6, %s1559_s28 }
 0x191   : > { %p1261_p7 = pnand %p1260_p4, %p1378_p5 }
 0x192   : > { %p1266_p11 = por %p1265_p10, %p1264_p9 }
 0x193   : > { %p1262_p8 = pneg %p1261_p7 }
 0x194   : > { %p1268_p13 = por %p1267_p12, %p1266_p11 }
 0x196   : > { %p1269_p0 = pnand %p1268_p13, %p1262_p8 }
 0x198   : > { %1272 = shalt.err (!%p1269_p0)
}
 0x199   : > { %1194 = dma.vmem_to_hbm [thread:$0]  (%p1378_p5), %s1561_s25, 128, %s1559_s28, %s1056_s29  }
 0x19a PF: > { %p1200_p1 = scmp.ge.s32.totalorder %s1307_s15, 2  ;;  %s1082_s17 = sand.u32 1, %s1295_s12  }
 0x19b   : > { %s1083_s19 = scalar_lea.sflag [#allocation3], %s1082_s17 }
 0x19c   : > { %p1197_p2 = pnand %p1200_p1, %p1382_p6 }
 0x19e   : > { %1290 = dma.done.wait (!%p1197_p2), %s1083_s19, 128  }
 0x19f   : > { %1292 = vsyncadd (!%p1197_p2), %s1083_s19, 4294967168  ;;  %p13_p3 = scmp.ge.s32.totalorder %s1365_s18, 4   ;;  %s1619_s12 = smov %s1299_s13 }
 0x1a0   : > { %s1620_s13 = smov %s1303_s14  ;;  %s1621_s14 = smov %s1376_s21 }
 0x1a1   : > { %s1622_s15 = smov %s1365_s18  ;;  %15 = sbr.rel (!%p13_p3) target bundleno = 3 (0x3), region = 75 }
 0x1a8   :  { %1088 = vsyncpa [#allocation3], 1 }
 0x1a9   :  { %1090 = vsyncpa [#allocation3 + $0x1], 1 }

</bundles_post_ra>
